<compile_context>
chip_gen: v7x
topology: tpu7x:2x2x1
jax: 0.10.0
libtpu: 0.0.40
codegen_flags: <defaults>
</compile_context>

<pallas_src>
import functools
import numpy as np
import jax
import jax.numpy as jnp
from jax.experimental import pallas as pl
from jax.experimental.pallas import tpu as pltpu

PYRAMIDS = (1, 2, 3, 6)


def _round_up(x, m):
    return (x + m - 1) // m * m


def _round_down(x, m):
    return x // m * m


# ---------------------------------------------------------------------------
# Host-side construction of the pool / upsample operators (exact PyTorch math)
# ---------------------------------------------------------------------------
def _pool_matrix(bins, size):
    """Adaptive average pool 1D as a (bins, size) matrix (PyTorch semantics)."""
    P = np.zeros((bins, size), np.float64)
    for i in range(bins):
        s = (i * size) // bins
        e = ((i + 1) * size + bins - 1) // bins  # ceil
        P[i, s:e] = 1.0 / (e - s)
    return P


def _upsample_matrix(size, bins):
    """Bilinear 1D upsample (align_corners=True) as a (size, bins) matrix."""
    U = np.zeros((size, bins), np.float64)
    if bins == 1:
        U[:, 0] = 1.0
        return U
    scale = (bins - 1) / (size - 1) if size > 1 else 0.0
    for y in range(size):
        src = y * scale
        y0 = int(np.floor(src))
        y1 = min(y0 + 1, bins - 1)
        f = src - y0
        U[y, y0] += 1.0 - f
        U[y, y1] += f
    return U


@functools.lru_cache(maxsize=None)
def _build_lowrank_operators(H, W, pyramids, hwp, rp):
    """PT (hwp, rp) and UT (rp, hwp) with  y_flat = x_flat + x_flat @ PT @ UT."""
    HW = H * W
    PT = np.zeros((hwp, rp), np.float32)
    UT = np.zeros((rp, hwp), np.float32)
    off = 0
    for b in pyramids:
        Ph, Pw = _pool_matrix(b, H), _pool_matrix(b, W)          # (b,H), (b,W)
        Uh, Uw = _upsample_matrix(H, b), _upsample_matrix(W, b)  # (H,b), (W,b)
        r = b * b
        # row-major vec:  vec(A X B^T) = (A kron B) vec(X)
        PT[:HW, off:off + r] = np.kron(Ph, Pw).T                 # (HW, b^2)
        UT[off:off + r, :HW] = np.kron(Uh, Uw).T                 # (b^2, HW)
        off += r
    return jnp.asarray(PT), jnp.asarray(UT)


@functools.lru_cache(maxsize=None)
def _level_ops(H, W, pyramids):
    mh = [_upsample_matrix(H, b) @ _pool_matrix(b, H) for b in pyramids]  # (H,H)
    mw = [_upsample_matrix(W, b) @ _pool_matrix(b, W) for b in pyramids]  # (W,W)
    return mh, mw


def _vmem_budget_bytes():
    """~75% of per-core VMEM: ~48 MiB on v7x, ~96 MiB on v5e/v6e."""
    cap = 64 << 20
    try:
        cap = int(pltpu.get_tpu_info().vmem_capacity_bytes)
    except Exception:
        pass
    return min(cap * 3 // 4, 100 << 20)


# ---------------------------------------------------------------------------
# Low-rank Pallas kernel: two lane-dense matmuls per channel block
# ---------------------------------------------------------------------------
def _ppm_lowrank_kernel(pt_ref, ut_ref, x_ref, o_ref):
    x = x_ref[...].astype(jnp.float32)                                   # (TM, hwp)
    t = jnp.dot(x, pt_ref[...], preferred_element_type=jnp.float32)     # (TM, rp)
    y = x + jnp.dot(t, ut_ref[...], preferred_element_type=jnp.float32)  # (TM, hwp)
    o_ref[...] = y.astype(o_ref.dtype)


def _ppm_lowrank(x, pyramids, hwp, rp, tm, ncp, vmem_limit):
    N, C, H, W = x.shape
    HW = H * W
    NC = N * C
    PT, UT = _build_lowrank_operators(H, W, pyramids, hwp, rp)

    x2 = x.reshape(NC, HW)
    if ncp != NC or hwp != HW:
        x2 = jnp.pad(x2, ((0, ncp - NC), (0, hwp - HW)))

    out = pl.pallas_call(
        _ppm_lowrank_kernel,
        out_shape=jax.ShapeDtypeStruct((ncp, hwp), x.dtype),
        grid_spec=pltpu.PrefetchScalarGridSpec(
            num_scalar_prefetch=0,
            grid=(ncp // tm,),
            in_specs=[
                # Constant index maps -> DMA'd once; footprint is only
                # hwp*512 B each after the low-rank change, so the default
                # double-buffer reservation is cheap (and accounted for in
                # the VMEM sizing below).
                # TODO(synk): pipeline_mode=pl.Buffered(1) on these two specs
                # once single-buffered constant operands are supported here.
                pl.BlockSpec((hwp, rp), lambda i: (0, 0)),
                pl.BlockSpec((rp, hwp), lambda i: (0, 0)),
                pl.BlockSpec((tm, hwp), lambda i: (i, 0)),   # lane-dense rows
            ],
            out_specs=pl.BlockSpec((tm, hwp), lambda i: (i, 0)),
        ),
        compiler_params=pltpu.CompilerParams(
            dimension_semantics=("parallel",),
            vmem_limit_bytes=int(vmem_limit),
        ),
    )(PT, UT, x2)

    return out[:NC, :HW].reshape(N, C, H, W)


def _ppm_jax_fallback(x, pyramids):
    # TODO(synk): column-tiled Pallas low-rank kernel for spatial sizes whose
    # (hwp x 128) operators / row blocks no longer fit VMEM; plain JAX here.
    H, W = x.shape[2], x.shape[3]
    mh, mw = _level_ops(H, W, pyramids)
    xf = x.astype(jnp.float32)
    feat = xf
    for A, B in zip(mh, mw):
        feat = feat + jnp.einsum(
            "hk,nckl,wl->nchw",
            jnp.asarray(A, jnp.float32), xf, jnp.asarray(B, jnp.float32))
    return feat.astype(x.dtype)


# ---------------------------------------------------------------------------
# Public entry point
# ---------------------------------------------------------------------------
def pyramid_pooling_module(x, pyramids=PYRAMIDS):
    """x: (N, C, H, W). Returns feat = x + sum_b upsample(pool_b(x))."""
    pyramids = tuple(pyramids)
    N, C, H, W = x.shape
    HW = H * W
    NC = N * C

    # Lane padding: 128-aligned; bump to 256 (v6e/v7x MXU width) when cheap.
    hwp = _round_up(HW, 128)
    if _round_up(HW, 256) == hwp or hwp >= 1024:
        hwp = _round_up(HW, 256)
    rp = _round_up(sum(b * b for b in pyramids), 128)    # rank 50 -> 128 lanes

    itemsize = x.dtype.itemsize
    row_align = max(8, 32 // max(itemsize, 1))           # 8 for f32, 16 for bf16

    budget = _vmem_budget_bytes()
    op_bytes = 2 * 2 * hwp * rp * 4                      # PT+UT, double-buffered
    per_row = 4 * hwp * itemsize + (2 * hwp + rp) * 4    # x/out blocks + f32 temps
    rows_budget = budget - op_bytes - (4 << 20)          # compiler-scratch headroom
    tm_cap = _round_down(max(rows_budget, 0) // per_row, row_align)
    if tm_cap < row_align:
        return _ppm_jax_fallback(x, pyramids)

    tm_target = 1024 if budget >= (80 << 20) else 512    # bigger rows on v5e/v6e
    tm = min(tm_target, tm_cap, _round_up(NC, row_align))
    tm = max(row_align, _round_down(tm, row_align))
    ncp = _round_up(NC, tm)
    # Guarantee >=2 grid steps when possible so both v7x TensorCores get work.
    while ncp // tm < 2 and tm > row_align:
        tm = max(row_align, _round_down(tm // 2, row_align))
        ncp = _round_up(NC, tm)

    return _ppm_lowrank(x, pyramids, hwp, rp, tm, ncp, budget)


# ---------------------------------------------------------------------------
# Pure-numpy reference (direct PyTorch semantics) for a sanity check
# ---------------------------------------------------------------------------
def _ref_ppm(x, pyramids=PYRAMIDS):
    N, C, H, W = x.shape
    feat = x.astype(np.float64).copy()
    for b in pyramids:
        pooled = np.zeros((N, C, b, b), np.float64)
        for i in range(b):
            hs, he = (i * H) // b, ((i + 1) * H + b - 1) // b
            for j in range(b):
                ws, we = (j * W) // b, ((j + 1) * W + b - 1) // b
                pooled[:, :, i, j] = x[:, :, hs:he, ws:we].mean(axis=(2, 3))
        up = np.zeros((N, C, H, W), np.float64)
        for y in range(H):
            sy = y * (b - 1) / (H - 1) if H > 1 else 0.0
            y0 = int(np.floor(sy)); y1 = min(y0 + 1, b - 1); fy = sy - y0
            for xx in range(W):
                sx = xx * (b - 1) / (W - 1) if W > 1 else 0.0
                x0 = int(np.floor(sx)); x1 = min(x0 + 1, b - 1); fx = sx - x0
                up[:, :, y, xx] = ((1 - fy) * (1 - fx) * pooled[:, :, y0, x0]
                                   + (1 - fy) * fx * pooled[:, :, y0, x1]
                                   + fy * (1 - fx) * pooled[:, :, y1, x0]
                                   + fy * fx * pooled[:, :, y1, x1])
        feat = feat + up
    return feat


if __name__ == "__main__":
    key = jax.random.PRNGKey(0)
    N, C, H, W = 2, 4, 16, 16
    x = jax.random.normal(key, (N, C, H, W), dtype=jnp.float32)

    out = pyramid_pooling_module(x)
    out = jax.block_until_ready(out)

    ref = _ref_ppm(np.asarray(x))
    np.testing.assert_allclose(np.asarray(out), ref, rtol=1e-4, atol=1e-4)

    print("KERNEL_OK")
</pallas_src>

<mosaic_0001>
module attributes {stable_mosaic.version = 11 : i64} {
  func.func @_ppm_lowrank_kernel(%arg0: i32, %arg1: memref<256x128xf32, #tpu.memory_space<vmem>>, %arg2: memref<128x256xf32, #tpu.memory_space<vmem>>, %arg3: memref<8x256xf32, #tpu.memory_space<vmem>>, %arg4: memref<8x256xf32, #tpu.memory_space<vmem>>) attributes {dimension_semantics = [#tpu.dimension_semantics<parallel>], iteration_bounds = array<i64: 1>, scalar_prefetch = 0 : i64, scratch_operands = 0 : i64, tpu.core_type = #tpu.core_type<tc>, window_params = [{pipeline_mode = #tpu.pipeline_mode<synchronous>, transform_indices = @transform_0, window_bounds = array<i64: 256, 128>}, {pipeline_mode = #tpu.pipeline_mode<synchronous>, transform_indices = @transform_1, window_bounds = array<i64: 128, 256>}, {transform_indices = @transform_2, window_bounds = array<i64: 8, 256>}, {transform_indices = @transform_3, window_bounds = array<i64: 8, 256>}]} {
    %c0 = arith.constant 0 : index
    %c0_0 = arith.constant 0 : index
    %0 = vector.load %arg3[%c0, %c0_0] : memref<8x256xf32, #tpu.memory_space<vmem>>, vector<8x256xf32>
    %c0_1 = arith.constant 0 : index
    %c0_2 = arith.constant 0 : index
    %1 = vector.load %arg1[%c0_1, %c0_2] : memref<256x128xf32, #tpu.memory_space<vmem>>, vector<256x128xf32>
    %cst = arith.constant dense<0.000000e+00> : vector<8x128xf32>
    %2 = tpu.matmul %0, %1, %cst {dimension_numbers = #tpu.dot_dimension_numbers<[1], [0], [0], [1], [0, 0, 1, 1], [], []>} : vector<8x256xf32>, vector<256x128xf32>, vector<8x128xf32> -> vector<8x128xf32>
    %c0_3 = arith.constant 0 : index
    %c0_4 = arith.constant 0 : index
    %3 = vector.load %arg2[%c0_3, %c0_4] : memref<128x256xf32, #tpu.memory_space<vmem>>, vector<128x256xf32>
    %cst_5 = arith.constant dense<0.000000e+00> : vector<8x256xf32>
    %4 = tpu.matmul %2, %3, %cst_5 {dimension_numbers = #tpu.dot_dimension_numbers<[1], [0], [0], [1], [0, 0, 1, 1], [], []>} : vector<8x128xf32>, vector<128x256xf32>, vector<8x256xf32> -> vector<8x256xf32>
    %5 = arith.addf %0, %4 : vector<8x256xf32>
    %c0_6 = arith.constant 0 : index
    %c0_7 = arith.constant 0 : index
    %6 = vector.load %arg4[%c0_6, %c0_7] : memref<8x256xf32, #tpu.memory_space<vmem>>, vector<8x256xf32>
    tpu.vector_store %arg4[%c0_6, %c0_7], %5 {strides = array<i32>} : memref<8x256xf32, #tpu.memory_space<vmem>>, vector<8x256xf32>,
    return
  }
  func.func @transform_0(%arg0: i32) -> (i32, i32) {
    %c0_i32 = arith.constant 0 : i32
    %c0_i32_0 = arith.constant 0 : i32
    %c0_i32_1 = arith.constant 0 : i32
    return %c0_i32, %c0_i32_0 : i32, i32
  }
  func.func @transform_1(%arg0: i32) -> (i32, i32) {
    %c0_i32 = arith.constant 0 : i32
    %c0_i32_0 = arith.constant 0 : i32
    %c0_i32_1 = arith.constant 0 : i32
    return %c0_i32, %c0_i32_0 : i32, i32
  }
  func.func @transform_2(%arg0: i32) -> (i32, i32) {
    %c0_i32 = arith.constant 0 : i32
    %c0_i32_0 = arith.constant 0 : i32
    return %arg0, %c0_i32 : i32, i32
  }
  func.func @transform_3(%arg0: i32) -> (i32, i32) {
    %c0_i32 = arith.constant 0 : i32
    %c0_i32_0 = arith.constant 0 : i32
    return %arg0, %c0_i32 : i32, i32
  }
}

</mosaic_0001>

<bundles_post_ra>
// kernel: tpu_custom_call.1
= control target key start
LH: loop header
LB: loop body
LE: loop exit
PB: predicated region body
PF: predicated region fallthrough
CT: control target
= control target key end

     0   :  { %8 = vsyncpa [#allocation3], 0  ;;  %s564_s0 = inlined_call_operand.hbm [shape: f32[256,128], index: 0, kind: input, shape index: {}]   ;;  %s565_s1 = inlined_call_operand.hbm [shape: f32[128,256], index: 1, kind: input, shape index: {}]   ;;  %s566_s2 = inlined_call_operand.hbm [shape: f32[8,256], index: 2, kind: input, shape index: {}]   ;;  %s567_s3 = inlined_call_operand.hbm [shape: f32[8,256], index: 3, kind: output, shape index: {}]  }
   0x1   :  { %9 = vsyncpa [#allocation6], 0 }
   0x2   :  { %10 = vsyncpa [#allocation4], 0  ;;  %s483_s12 = smov [#allocation5]   ;;  %s389_s16 = scalar_lea.hbm %s565_s1, 4096 }
   0x3   :  { %s28_s13 = sshll.u32 %s483_s12, 4  ;;  %p390_p0 = scmp.ne.s32.totalorder %s565_s1, %s389_s16  ;;  %s29_s13 = int_to_ptr.vmem [resolvable:$true] %s28_s13 }
   0x4   :  { %p393_p1 = scmp.lt.u32.totalorder %s389_s16, %s565_s1 }
   0x6   :  { %p395_p2 = pnand %p393_p1, %p390_p0 }
   0x8   :  { %398 = shalt.err (!%p395_p2)
}
   0x9   :  { %s399_s21 = scalar_lea.vmem %s29_s13, 4096  ;;  %p404_p4 = scmp.lt.s32.totalorder %s29_s13, %s29_s13 }
   0xa   :  { %p400_p3 = scmp.ne.s32.totalorder %s29_s13, %s399_s21  ;;  %p405_p5 = scmp.lt.s32.totalorder %s399_s21, %s399_s21 }
   0xc   :  { %p406_p6 = por %p405_p5, %p404_p4 }
   0xe   :  { %p407_p7 = pnand %p406_p6, %p400_p3 }
  0x10   :  { %410 = shalt.err (!%p407_p7)
}
  0x11   :  { %s484_s22 = smov 256   ;;  %s485_s23 = smov 16  }
  0x12   :  { %34 = dma.hbm_to_vmem [thread:$0]  %s565_s1, 4096, %s29_s13, [#allocation6], %s484_s22, %s484_s22, %s485_s23  }
  0x13   :  { %s486_s26 = smov [#allocation2]   ;;  %s411_s30 = scalar_lea.hbm %s564_s0, 4096 }
  0x14   :  { %s16_s27 = sshll.u32 %s486_s26, 4  ;;  %p412_p8 = scmp.ne.s32.totalorder %s564_s0, %s411_s30  ;;  %s17_s27 = int_to_ptr.vmem [resolvable:$true] %s16_s27 }
  0x15   :  { %p415_p9 = scmp.lt.u32.totalorder %s411_s30, %s564_s0 }
  0x17   :  { %p417_p10 = pnand %p415_p9, %p412_p8 }
  0x19   :  { %420 = shalt.err (!%p417_p10)
}
  0x1a   :  { %s421_s8 = scalar_lea.vmem %s17_s27, 4096  ;;  %p426_p12 = scmp.lt.s32.totalorder %s17_s27, %s17_s27 }
  0x1b   :  { %p422_p11 = scmp.ne.s32.totalorder %s17_s27, %s421_s8  ;;  %p427_p13 = scmp.lt.s32.totalorder %s421_s8, %s421_s8 }
  0x1d   :  { %p428_p0 = por %p427_p13, %p426_p12 }
  0x1f   :  { %p429_p1 = pnand %p428_p0, %p422_p11 }
  0x21   :  { %432 = shalt.err (!%p429_p1)
}
  0x22   :  { %s487_s1 = smov 128   ;;  %s488_s9 = smov 8  }
  0x23   :  { %22 = dma.hbm_to_vmem [thread:$0]  %s564_s0, 4096, %s17_s27, [#allocation3], %s487_s1, %s487_s1, %s488_s9  }
  0x24   :  { %s489_s12 = smov [#allocation7]   ;;  %s433_s16 = scalar_lea.hbm %s566_s2, 256 }
  0x25   :  { %s41_s13 = sshll.u32 %s489_s12, 4  ;;  %p434_p2 = scmp.ne.s32.totalorder %s566_s2, %s433_s16  ;;  %s42_s13 = int_to_ptr.vmem [resolvable:$true] %s41_s13 }
  0x26   :  { %p437_p3 = scmp.lt.u32.totalorder %s433_s16, %s566_s2 }
  0x28   :  { %p439_p4 = pnand %p437_p3, %p434_p2 }
  0x2a   :  { %442 = shalt.err (!%p439_p4)
}
  0x2b   :  { %s443_s21 = scalar_lea.vmem %s42_s13, 256  ;;  %p448_p6 = scmp.lt.s32.totalorder %s42_s13, %s42_s13 }
  0x2c   :  { %p444_p5 = scmp.ne.s32.totalorder %s42_s13, %s443_s21  ;;  %p449_p7 = scmp.lt.s32.totalorder %s443_s21, %s443_s21 }
  0x2e   :  { %p450_p8 = por %p449_p7, %p448_p6 }
  0x30   :  { %p451_p9 = pnand %p450_p8, %p444_p5 }
  0x32   :  { %454 = shalt.err (!%p451_p9)
}
  0x33   :  { %44 = dma.hbm_to_vmem [thread:$0]  %s566_s2, 256, %s42_s13, [#allocation6]  }
  0x34   :  { %477 = dma.done.wait [#allocation3], 4096  }
  0x35   :  { %478 = vsyncadd [#allocation3], 4294963200 }
  0x36   :  { %479 = dma.done.wait [#allocation6], 4352  }
  0x37   :  { %480 = vsyncadd [#allocation6], 4294962944  ;;  %v72_v0 = vld [vmem:[#allocation2 + $0x80] sm:$0xff]  ;;  %v73_v1 = vld [vmem:[#allocation2 + $0x88] sm:$0xff]  ;;  %s491_s2 = smov [#allocation8]  }
  0x38   :  { %v56_v2 = vld [vmem:[#allocation2] sm:$0xff]  ;;  %v316_v3 = vpack.c.bf16 %v73_v1, %v72_v0  ;;  %v57_v4 = vld [vmem:[#allocation2 + $0x8] sm:$0xff]  ;;  %v74_v5 = vld [vmem:[#allocation2 + $0x90] sm:$0xff]  ;;  %s271_s23 = sshll.u32 %s491_s2, 4  ;;  %s272_s23 = int_to_ptr.vmem [resolvable:$true] %s271_s23 }
  0x39   :  { %v75_v6 = vld [vmem:[#allocation2 + $0x98] sm:$0xff]  ;;  %v318_v7 = vpack.c.bf16 %v57_v4, %v56_v2  ;;  %v58_v9 = vld [vmem:[#allocation2 + $0x10] sm:$0xff]  ;;  %v76_v11 = vld [vmem:[#allocation2 + $0xa0] sm:$0xff]  ;;  %s455_s24 = scalar_lea.vmem %s272_s23, 256  ;;  %p460_p11 = scmp.lt.s32.totalorder %s272_s23, %s272_s23 }
  0x3a   :  { %v320_v8 = vpack.c.bf16 %v75_v6, %v74_v5  ;;  %v59_v10 = vld [vmem:[#allocation2 + $0x18] sm:$0xff]  ;;  %317 = vmatprep.subr.bf16.mxu0 %v316_v3  ;;  %v77_v12 = vld [vmem:[#allocation2 + $0xa8] sm:$0xff]  ;;  %v60_v15 = vld [vmem:[#allocation2 + $0x20] sm:$0xff]  ;;  %p456_p10 = scmp.ne.s32.totalorder %s272_s23, %s455_s24  ;;  %p461_p12 = scmp.lt.s32.totalorder %s455_s24, %s455_s24 }
  0x3b   :  { %319 = vmatpush3.bf16.msra.mxu0 %v318_v7  ;;  %v322_v13 = vpack.c.bf16 %v59_v10, %v58_v9  ;;  %v324_v14 = vpack.c.bf16 %v77_v12, %v76_v11  ;;  %v61_v16 = vld [vmem:[#allocation2 + $0x28] sm:$0xff]  ;;  %v78_v17 = vld [vmem:[#allocation2 + $0xb0] sm:$0xff]  ;;  %v79_v18 = vld [vmem:[#allocation2 + $0xb8] sm:$0xff] }
  0x3c   :  { %321 = vmatprep.subr.bf16.mxu0 %v320_v8  ;;  %v326_v19 = vpack.c.bf16 %v61_v16, %v60_v15  ;;  %v328_v20 = vpack.c.bf16 %v79_v18, %v78_v17  ;;  %v62_v21 = vld [vmem:[#allocation2 + $0x30] sm:$0xff]  ;;  %v63_v22 = vld [vmem:[#allocation2 + $0x38] sm:$0xff]  ;;  %v80_v23 = vld [vmem:[#allocation2 + $0xc0] sm:$0xff]  ;;  %p462_p13 = por %p461_p12, %p460_p11 }
  0x3d   :  { %v81_v24 = vld [vmem:[#allocation2 + $0xc8] sm:$0xff]  ;;  %v64_v26 = vld [vmem:[#allocation2 + $0x40] sm:$0xff]  ;;  %v161_v29 = vld [vmem:[#allocation5 + $0x18] sm:$0xff]  ;;  %v330_v30 = vpack.c.bf16 %v63_v22, %v62_v21 }
  0x3e   :  { %v548_v25 = vld [vmem:[#allocation7 + $0x8] sm:$0xff]  ;;  %v82_v31 = vld [vmem:[#allocation2 + $0xd0] sm:$0xff]  ;;  %v158_v33 = vld [vmem:[#allocation5] sm:$0xff]  ;;  %v332_v36 = vpack.c.bf16 %v81_v24, %v80_v23  ;;  %p463_p0 = pnand %p462_p13, %p456_p10 }
  0x3f   :  { %323 = vmatpush3.bf16.msra.mxu0 %v322_v13  ;;  %v65_v27 = vld [vmem:[#allocation2 + $0x48] sm:$0xff]  ;;  %152 = vmatprep.mubr.f32.mxu0 %v548_v25  ;;  %v160_v34 = vld [vmem:[#allocation5 + $0x10] sm:$0xff]  ;;  %v165_v38 = vld [vmem:[#allocation5 + $0x38] sm:$0xff] }
  0x40   :  { %325 = vmatprep.subr.bf16.mxu0 %v324_v14  ;;  %v159_v28 = vld [vmem:[#allocation5 + $0x8] sm:$0xff]  ;;  %v350_v37 = vpack.c.bf16 %v160_v34, %v158_v33  ;;  %v162_v39 = vld [vmem:[#allocation5 + $0x20] sm:$0xff]  ;;  %v164_v40 = vld [vmem:[#allocation5 + $0x30] sm:$0xff]  ;;  %v334_v46 = vpack.c.bf16 %v65_v27, %v64_v26 }
  0x41   :  { %v348_v32 = vpack.c.bf16 %v161_v29, %v159_v28  ;;  %v163_v35 = vld [vmem:[#allocation5 + $0x28] sm:$0xff]  ;;  %v83_v41 = vld [vmem:[#allocation2 + $0xd8] sm:$0xff]  ;;  %v354_v45 = vpack.c.bf16 %v164_v40, %v162_v39  ;;  %v66_v47 = vld [vmem:[#allocation2 + $0x50] sm:$0xff] }
  0x42   :  { %v352_v42 = vpack.c.bf16 %v165_v38, %v163_v35  ;;  %v167_v43 = vld [vmem:[#allocation5 + $0x48] sm:$0xff]  ;;  %v169_v44 = vld [vmem:[#allocation5 + $0x58] sm:$0xff]  ;;  %v166_v49 = vld [vmem:[#allocation5 + $0x40] sm:$0xff]  ;;  %v336_v51 = vpack.c.bf16 %v83_v41, %v82_v31  ;;  %v490_v35 = vmov 0.0  }
  0x43   :  { %327 = vmatpush3.bf16.msra.mxu0 %v326_v19  ;;  %349 = vmatprep.subr.bf16.mxu1 %v348_v32  ;;  %v356_v48 = vpack.c.bf16 %v169_v44, %v167_v43  ;;  %v168_v50 = vld [vmem:[#allocation5 + $0x50] sm:$0xff]  ;;  %v67_v52 = vld [vmem:[#allocation2 + $0x58] sm:$0xff]  ;;  %v171_v53 = vld [vmem:[#allocation5 + $0x68] sm:$0xff] }
  0x44   :  { %329 = vmatprep.subr.bf16.mxu0 %v328_v20  ;;  %351 = vmatpush1.bf16.msra.mxu1 %v350_v37  ;;  %v173_v54 = vld [vmem:[#allocation5 + $0x78] sm:$0xff]  ;;  %v84_v55 = vld [vmem:[#allocation2 + $0xe0] sm:$0xff]  ;;  %v85_v56 = vld [vmem:[#allocation2 + $0xe8] sm:$0xff]  ;;  %v358_v57 = vpack.c.bf16 %v168_v50, %v166_v49  ;;  %v338_v58 = vpack.c.bf16 %v67_v52, %v66_v47 }
  0x45   :  { %353 = vmatprep.subr.bf16.mxu1 %v352_v42  ;;  %v68_v59 = vld [vmem:[#allocation2 + $0x60] sm:$0xff]  ;;  %v360_v60 = vpack.c.bf16 %v173_v54, %v171_v53  ;;  %v172_v62 = vld [vmem:[#allocation5 + $0x70] sm:$0xff]  ;;  %v340_v63 = vpack.c.bf16 %v85_v56, %v84_v55  ;;  %v69_v0 = vld [vmem:[#allocation2 + $0x68] sm:$0xff]  ;;  %254 = vmatprep.mubr.f32.mxu1 %v490_v35 }
  0x46   :  { %v170_v61 = vld [vmem:[#allocation5 + $0x60] sm:$0xff]  ;;  %v175_v1 = vld [vmem:[#allocation5 + $0x88] sm:$0xff]  ;;  %v177_v2 = vld [vmem:[#allocation5 + $0x98] sm:$0xff]  ;;  %v342_v6 = vpack.c.bf16 %v69_v0, %v68_v59 }
  0x47   :  { %331 = vmatpush3.bf16.msra.mxu0 %v330_v30  ;;  %v86_v3 = vld [vmem:[#allocation2 + $0xf0] sm:$0xff]  ;;  %v87_v4 = vld [vmem:[#allocation2 + $0xf8] sm:$0xff]  ;;  %v362_v5 = vpack.c.bf16 %v172_v62, %v170_v61  ;;  %v364_v8 = vpack.c.bf16 %v177_v2, %v175_v1  ;;  %v174_v9 = vld [vmem:[#allocation5 + $0x80] sm:$0xff] }
  0x48   :  { %333 = vmatprep.subr.bf16.mxu0 %v332_v36  ;;  %355 = vmatpush1.bf16.msra.mxu1 %v354_v45  ;;  %v70_v7 = vld [vmem:[#allocation2 + $0x70] sm:$0xff]  ;;  %v344_v11 = vpack.c.bf16 %v87_v4, %v86_v3  ;;  %v71_v12 = vld [vmem:[#allocation2 + $0x78] sm:$0xff]  ;;  %v179_v13 = vld [vmem:[#allocation5 + $0xa8] sm:$0xff] }
  0x49   :  { %357 = vmatprep.subr.bf16.mxu1 %v356_v48  ;;  %v176_v10 = vld [vmem:[#allocation5 + $0x90] sm:$0xff]  ;;  %v181_v14 = vld [vmem:[#allocation5 + $0xb8] sm:$0xff]  ;;  %v346_v16 = vpack.c.bf16 %v71_v12, %v70_v7  ;;  %v178_v18 = vld [vmem:[#allocation5 + $0xa0] sm:$0xff] }
  0x4a   :  { %v366_v15 = vpack.c.bf16 %v176_v10, %v174_v9  ;;  %v368_v17 = vpack.c.bf16 %v181_v14, %v179_v13  ;;  %v180_v19 = vld [vmem:[#allocation5 + $0xb0] sm:$0xff]  ;;  %v183_v20 = vld [vmem:[#allocation5 + $0xc8] sm:$0xff]  ;;  %v185_v21 = vld [vmem:[#allocation5 + $0xd8] sm:$0xff] }
  0x4b   :  { %335 = vmatpush3.bf16.msra.mxu0 %v334_v46  ;;  %v370_v22 = vpack.c.bf16 %v180_v19, %v178_v18  ;;  %v54_v23 = vld [vmem:[#allocation7] sm:$0xff]  ;;  %v372_v24 = vpack.c.bf16 %v185_v21, %v183_v20  ;;  %v184_v27 = vld [vmem:[#allocation5 + $0xd0] sm:$0xff]  ;;  %v187_v29 = vld [vmem:[#allocation5 + $0xe8] sm:$0xff] }
  0x4c   :  { %337 = vmatprep.subr.bf16.mxu0 %v336_v51  ;;  %359 = vmatpush1.bf16.msra.mxu1 %v358_v57  ;;  %v182_v26 = vld [vmem:[#allocation5 + $0xc0] sm:$0xff]  ;;  %v189_v30 = vld [vmem:[#allocation5 + $0xf8] sm:$0xff]  ;;  %v188_v33 = vld [vmem:[#allocation5 + $0xf0] sm:$0xff] }
  0x4d   :  { %361 = vmatprep.subr.bf16.mxu1 %v360_v60  ;;  %v374_v28 = vpack.c.bf16 %v184_v27, %v182_v26  ;;  %v376_v31 = vpack.c.bf16 %v189_v30, %v187_v29  ;;  %v186_v32 = vld [vmem:[#allocation5 + $0xe0] sm:$0xff] }
  0x4e   :  { %v378_v34 = vpack.c.bf16 %v188_v33, %v186_v32 }
  0x4f   :  { %339 = vmatpush3.bf16.msra.mxu0 %v338_v58 }
  0x50   :  { %341 = vmatprep.subr.bf16.mxu0 %v340_v63  ;;  %363 = vmatpush1.bf16.msra.mxu1 %v362_v5 }
  0x51   :  { %365 = vmatprep.subr.bf16.mxu1 %v364_v8 }
  0x53   :  { %343 = vmatpush3.bf16.msra.mxu0 %v342_v6 }
  0x54   :  { %345 = vmatprep.subr.bf16.mxu0 %v344_v11  ;;  %367 = vmatpush1.bf16.msra.mxu1 %v366_v15 }
  0x55   :  { %369 = vmatprep.subr.bf16.mxu1 %v368_v17 }
  0x57   :  { %347 = vmatpush3.bf16.msra.mxu0 %v346_v16 }
  0x58   :  { %371 = vmatpush1.bf16.msra.mxu1 %v370_v22 }
  0x59   :  { %373 = vmatprep.subr.bf16.mxu1 %v372_v24 }
  0x5a   :  { %153 = vmatmul.mubr.f32.vlgmr.msra.gmra.mrb[0].mxu0 %v54_v23 }
  0x5c   :  { %375 = vmatpush1.bf16.msra.mxu1 %v374_v28 }
  0x5d   :  { %377 = vmatprep.subr.bf16.mxu1 %v376_v31 }
  0x60   :  { %379 = vmatpush1.bf16.msra.mxu1 %v378_v34 }
 0x12d   :  { %v313_v36 = vpop.f32.mrb[0].mxu0 }
 0x12e   :  { %v314_v37 = vpop.f32.mrb[1].mxu0 }
 0x12f   :  { %v315_v38 = vadd.f32 %v314_v37, %v313_v36 }
 0x131   :  { %255 = vmatmul.mubr.f32.vlgmr.msra.gmra.mrb[0].mxu1 %v315_v38 }
 0x204   :  { %v256_v39 = vpop.f32.mrb[0].mxu1 }
 0x205   :  { %v261_v40 = vadd.f32 %v256_v39, %v54_v23  ;;  %v258_v41 = vpop.f32.mrb[1].mxu1 }
 0x206   :  { %v262_v42 = vadd.f32 %v258_v41, %v548_v25 }
 0x207   :  { %263 = vst [vmem:[#allocation8] sm:$0xff] %v261_v40 }
 0x208   :  { %264 = vst [vmem:[#allocation8 + $0x8] sm:$0xff] %v262_v42 }
 0x209   :  { %466 = shalt.err (!%p463_p0)
}
 0x20a   :  { %s467_s27 = scalar_lea.hbm %s567_s3, 256 }
 0x20b   :  { %p468_p1 = scmp.ne.s32.totalorder %s567_s3, %s467_s27  ;;  %p471_p2 = scmp.lt.u32.totalorder %s467_s27, %s567_s3 }
 0x20d   :  { %p473_p3 = pnand %p471_p2, %p468_p1 }
 0x20f   :  { %476 = shalt.err (!%p473_p3)
}
 0x210   :  { %274 = dma.vmem_to_hbm [thread:$0]  %s272_s23, 256, %s567_s3, [#allocation4]  }
 0x211   :  { %481 = dma.done.wait [#allocation4], 256  }
 0x212   :  { %482 = vsyncadd [#allocation4], 4294967040 }
 0x213   :  { %278 = vsyncpa [#allocation3], 1 }
 0x214   :  { %279 = vsyncpa [#allocation6], 1 }
 0x215   :  { %280 = vsyncpa [#allocation4], 1 }

</bundles_post_ra>
